<compile_context>
chip_gen: v7x
topology: tpu7x:2x2x1
jax: 0.10.0
libtpu: 0.0.40
codegen_flags: <defaults>
</compile_context>

<pallas_src>
import functools

import jax
import jax.numpy as jnp
from jax.experimental import pallas as pl
from jax.experimental.pallas import tpu as pltpu

# ---------------------------------------------------------------------------
# Model hyper-parameters (small, consistent with the module's __init__)
# ---------------------------------------------------------------------------
B = 8           # batch
NGENES = 16     # 'NGENES'
NCONVS = 4      # 'NCONVS'
H1 = 32         # 'H1'
H2 = 32         # 'H2'
H3 = 32         # 'H3'
DH = 16         # 'DH'
NRESP = 3       # len(RESP_TYPES)
FLAT = NGENES * NCONVS          # 64
XW = 2 * NGENES                 # 32  (raw interleaved gene features)
HEADW = NRESP * DH              # 48  (fused DSP width)
BN_EPS = 1e-5
LEAKY_SLOPE = 0.01

# Single weight slab: every matrix zero-padded to 128 lanes, stacked on rows.
SLAB_W = 128
R_CONV = 0                      # rows   0: 32, cols :FLAT
R_W1 = R_CONV + XW              # rows  32: 96, cols :H1
R_W2 = R_W1 + FLAT              # rows  96:128, cols :H2
R_W3 = R_W2 + H1                # rows 128:160, cols :H3
R_WD = R_W3 + H2                # rows 160:192, cols :HEADW
R_WO = R_WD + H3                # rows 192:240, cols :SLAB_W (lane-dense)
SLAB_ROWS = R_WO + HEADW        # 240 (multiple of 8)

BIAS_ROWS = 8                   # one (8,128) f32 vreg tile

# Batch tiling policy.
_DEFAULT_BATCH_TILE = 2048      # fits <10 MiB VMEM incl. double-buffers
_SPLIT_THRESHOLD = 1024         # above this, force >=2 grid steps (v7x: 2 TCs)
_VMEM_LIMIT_BYTES = 24 * 1024 * 1024   # portable cap (v7x scoped default 32 MiB)


# ---------------------------------------------------------------------------
# Kernel: whole forward pass, 6 MXU matmuls, 3 VMEM inputs, 1 lane-dense out.
# ---------------------------------------------------------------------------
def net_forward_kernel(x_ref, w_ref, b_ref, out_ref):
    x = x_ref[...]                                               # (TB, 32)

    # Conv2d + ReLU as one matmul (double ReLU in torch is idempotent).
    a0 = jnp.maximum(
        jnp.dot(x, w_ref[R_CONV:R_CONV + XW, :FLAT],
                preferred_element_type=jnp.float32)
        + b_ref[0:1, :FLAT], 0.0)                                # (TB, 64)

    # fc1 -> ReLU            (bn1 folded into fc2's weights/bias)
    h1 = jnp.maximum(
        jnp.dot(a0, w_ref[R_W1:R_W1 + FLAT, :H1],
                preferred_element_type=jnp.float32)
        + b_ref[1:2, :H1], 0.0)

    # fc2' -> ReLU           (bn2 folded into fc3's weights/bias)
    h2 = jnp.maximum(
        jnp.dot(h1, w_ref[R_W2:R_W2 + H1, :H2],
                preferred_element_type=jnp.float32)
        + b_ref[2:3, :H2], 0.0)

    # fc3' -> ReLU           (bn3 folded into the fused DSP head weights)
    h3 = jnp.maximum(
        jnp.dot(h2, w_ref[R_W3:R_W3 + H2, :H3],
                preferred_element_type=jnp.float32)
        + b_ref[3:4, :H3], 0.0)

    # Fused DSP heads -> leaky_relu -> block-diagonal output heads (padded to
    # 128 lanes so the final store is an unmasked, lane-dense vst).
    d = (jnp.dot(h3, w_ref[R_WD:R_WD + H3, :HEADW],
                 preferred_element_type=jnp.float32)
         + b_ref[4:5, :HEADW])
    d = jnp.maximum(d, LEAKY_SLOPE * d)                           # F.leaky_relu
    out_ref[...] = (jnp.dot(d, w_ref[R_WO:R_WO + HEADW, :],
                            preferred_element_type=jnp.float32)
                    + b_ref[5:6, :])                              # (TB, 128)


# ---------------------------------------------------------------------------
# Host-side folding / packing of the raw per-layer parameters.
# ---------------------------------------------------------------------------
def pack_params(p):
    # Conv as an INTERLEAVED sparse matmul (matches x.reshape(B, 2*NGENES)):
    #   W[2g+0, c*G+g] = w[c,0];  W[2g+1, c*G+g] = w[c,1]
    eye_g = jnp.eye(NGENES, dtype=jnp.float32)
    wconv = jnp.concatenate(
        [jnp.kron(eye_g, p["conv_w"][c].reshape(2, 1)) for c in range(NCONVS)],
        axis=1)                                                   # (32, 64)
    bconv = jnp.repeat(p["conv_b"], NGENES).reshape(1, FLAT)      # (1, 64)

    # Fold BN affines into the following layer:  W' = diag(s) @ W,  b' = b + t @ W.
    w1, b1 = p["w1"], p["b1"]
    w2 = p["bn1_s"][0][:, None] * p["w2"]
    b2 = p["b2"] + p["bn1_b"] @ p["w2"]
    w3 = p["bn2_s"][0][:, None] * p["w3"]
    b3 = p["b3"] + p["bn2_b"] @ p["w3"]

    # Fuse the NRESP DSP heads along the lane axis, fold BN3 into them.
    wd_full = jnp.concatenate([p["wd"][i] for i in range(NRESP)], axis=1)  # (32, 48)
    bd_full = jnp.concatenate([p["bd"][i] for i in range(NRESP)], axis=1)  # (1, 48)
    wd = p["bn3_s"][0][:, None] * wd_full
    bd = bd_full + p["bn3_b"] @ wd_full

    # Block-diagonal fused output heads, zero-padded to 128 lanes (lane-dense out).
    wo = jnp.zeros((HEADW, SLAB_W), jnp.float32)
    for i in range(NRESP):
        wo = wo.at[i * DH:(i + 1) * DH, i].set(p["wo"][i][:, 0])
    bo = jnp.zeros((1, SLAB_W), jnp.float32).at[0, :NRESP].set(p["bo"])

    # One (240, 128) weight slab.
    def pad128(w):
        return jnp.pad(w, ((0, 0), (0, SLAB_W - w.shape[1])))
    wslab = jnp.concatenate(
        [pad128(wconv), pad128(w1), pad128(w2), pad128(w3), pad128(wd), wo],
        axis=0)                                                   # (240, 128)

    # One (8, 128) bias tile.
    def pad_row(v):
        v = v.reshape(1, -1)
        return jnp.pad(v, ((0, 0), (0, SLAB_W - v.shape[-1])))
    biases = jnp.concatenate(
        [pad_row(bconv), pad_row(b1), pad_row(b2), pad_row(b3),
         pad_row(bd), bo,
         jnp.zeros((BIAS_ROWS - 6, SLAB_W), jnp.float32)], axis=0)

    return {"w": wslab, "b": biases}


# ---------------------------------------------------------------------------
# Wrapper
# ---------------------------------------------------------------------------
def _pick_batch_tile(bx, batch_tile):
    if bx > batch_tile:
        return batch_tile
    if bx >= _SPLIT_THRESHOLD:
        # big-but-single-tile batch: split into >=2 steps so both v7x TCs work
        return ((pl.cdiv(bx, 2) + 7) // 8) * 8
    return bx


@functools.partial(jax.jit, static_argnames=("batch_tile",))
def net_forward(x, packed, *, batch_tile=_DEFAULT_BATCH_TILE):
    """x: (B, NGENES, 2) float32 -> (B, NRESP) float32."""
    bx = x.shape[0]
    xflat = x.reshape(bx, XW)            # free view of the contiguous input

    tb = _pick_batch_tile(bx, batch_tile)
    grid = (pl.cdiv(bx, tb),)

    out_padded = pl.pallas_call(
        net_forward_kernel,
        out_shape=jax.ShapeDtypeStruct((bx, SLAB_W), jnp.float32),
        grid=grid,
        in_specs=[
            pl.BlockSpec((tb, XW), lambda i: (i, 0)),            # x (batch-tiled)
            pl.BlockSpec((SLAB_ROWS, SLAB_W), lambda i: (0, 0)),  # weight slab
            pl.BlockSpec((BIAS_ROWS, SLAB_W), lambda i: (0, 0)),  # bias tile
        ],
        out_specs=pl.BlockSpec((tb, SLAB_W), lambda i: (i, 0)),   # lane-dense
        compiler_params=pltpu.CompilerParams(
            dimension_semantics=("parallel",),
            vmem_limit_bytes=_VMEM_LIMIT_BYTES),
    )(xflat, packed["w"], packed["b"])

    return out_padded[:, :NRESP]


# ---------------------------------------------------------------------------
# Deterministic parameter construction (shapes from the module __init__)
# ---------------------------------------------------------------------------
def make_params(key):
    keys = jax.random.split(key, 16)

    def lin_w(k, fan_in, fan_out):
        bound = 1.0 / jnp.sqrt(fan_in)
        # stored transposed: (fan_in, fan_out) so forward does x @ W
        return jax.random.uniform(k, (fan_in, fan_out), jnp.float32, -bound, bound)

    def lin_b(k, fan_in, fan_out):
        bound = 1.0 / jnp.sqrt(fan_in)
        return jax.random.uniform(k, (1, fan_out), jnp.float32, -bound, bound)

    # Conv2d(1, NCONVS, kernel_size=(1,2)): weight (NCONVS, 1, 1, 2) -> (NCONVS, 2)
    cb = 1.0 / jnp.sqrt(2.0)
    conv_w = jax.random.uniform(keys[0], (NCONVS, 2), jnp.float32, -cb, cb)
    conv_b = jax.random.uniform(keys[1], (NCONVS,), jnp.float32, -cb, cb)

    # BatchNorm1d (fresh init, eval mode): gamma=1, beta=0, mean=0, var=1
    def bn_affine(h):
        gamma = jnp.ones((1, h), jnp.float32)
        beta = jnp.zeros((1, h), jnp.float32)
        mean = jnp.zeros((1, h), jnp.float32)
        var = jnp.ones((1, h), jnp.float32)
        scale = gamma / jnp.sqrt(var + BN_EPS)
        shift = beta - mean * scale
        return scale, shift

    bn1_s, bn1_b = bn_affine(H1)
    bn2_s, bn2_b = bn_affine(H2)
    bn3_s, bn3_b = bn_affine(H3)

    wd = jnp.stack([lin_w(k, H3, DH) for k in jax.random.split(keys[8], NRESP)])
    bd = jnp.stack([lin_b(k, H3, DH) for k in jax.random.split(keys[9], NRESP)])   # (NRESP,1,DH)
    wo = jnp.stack([lin_w(k, DH, 1) for k in jax.random.split(keys[10], NRESP)])   # (NRESP,DH,1)
    bo = jnp.concatenate(
        [lin_b(k, DH, 1)[:, 0] for k in jax.random.split(keys[11], NRESP)])        # (NRESP,)

    return {
        "conv_w": conv_w, "conv_b": conv_b,
        "w1": lin_w(keys[2], FLAT, H1), "b1": lin_b(keys[3], FLAT, H1),
        "bn1_s": bn1_s, "bn1_b": bn1_b,
        "w2": lin_w(keys[4], H1, H2), "b2": lin_b(keys[5], H1, H2),
        "bn2_s": bn2_s, "bn2_b": bn2_b,
        "w3": lin_w(keys[6], H2, H3), "b3": lin_b(keys[7], H2, H3),
        "bn3_s": bn3_s, "bn3_b": bn3_b,
        "wd": wd, "bd": bd, "wo": wo, "bo": bo,
    }


# Pure-JAX reference of the same forward pass (unfolded, for a sanity check).
def reference_forward(x, p):
    xa, xb = x[:, :, 0], x[:, :, 1]
    a0 = jnp.stack(
        [xa * p["conv_w"][c, 0] + xb * p["conv_w"][c, 1] + p["conv_b"][c]
         for c in range(NCONVS)], axis=1)                       # (B, C, G)
    a0 = jnp.maximum(a0.reshape(x.shape[0], -1), 0.0)
    a1 = jnp.maximum(a0 @ p["w1"] + p["b1"], 0.0) * p["bn1_s"] + p["bn1_b"]
    a2 = jnp.maximum(a1 @ p["w2"] + p["b2"], 0.0) * p["bn2_s"] + p["bn2_b"]
    a3 = jnp.maximum(a2 @ p["w3"] + p["b3"], 0.0) * p["bn3_s"] + p["bn3_b"]
    cols = []
    for i in range(NRESP):
        d = a3 @ p["wd"][i] + p["bd"][i]
        d = jnp.where(d > 0, d, LEAKY_SLOPE * d)
        cols.append(d @ p["wo"][i] + p["bo"][i])
    return jnp.concatenate(cols, axis=1)


if __name__ == "__main__":
    key = jax.random.PRNGKey(0)
    k_x, k_p = jax.random.split(key)
    x = jax.random.normal(k_x, (B, NGENES, 2), dtype=jnp.float32)
    params = make_params(k_p)
    packed = pack_params(params)   # host-side folding, outside the kernel

    out = net_forward(x, packed)
    out = jax.block_until_ready(out)

    ref = reference_forward(x, params)
    assert out.shape == (B, NRESP)
    assert jnp.allclose(out, ref, rtol=2e-5, atol=2e-5), "mismatch vs JAX reference"

    print("KERNEL_OK")
</pallas_src>

<mosaic_0001>
module attributes {stable_mosaic.version = 11 : i64} {
  func.func @net_forward_kernel(%arg0: i32, %arg1: memref<8x32xf32, #tpu.memory_space<vmem>>, %arg2: memref<240x128xf32, #tpu.memory_space<vmem>>, %arg3: memref<8x128xf32, #tpu.memory_space<vmem>>, %arg4: memref<8x128xf32, #tpu.memory_space<vmem>>) attributes {dimension_semantics = [#tpu.dimension_semantics<parallel>], iteration_bounds = array<i64: 1>, scalar_prefetch = 0 : i64, scratch_operands = 0 : i64, tpu.core_type = #tpu.core_type<tc>, window_params = [{transform_indices = @transform_0, window_bounds = array<i64: 8, 32>}, {pipeline_mode = #tpu.pipeline_mode<synchronous>, transform_indices = @transform_1, window_bounds = array<i64: 240, 128>}, {pipeline_mode = #tpu.pipeline_mode<synchronous>, transform_indices = @transform_2, window_bounds = array<i64: 8, 128>}, {transform_indices = @transform_3, window_bounds = array<i64: 8, 128>}]} {
    %c0 = arith.constant 0 : index
    %c0_0 = arith.constant 0 : index
    %0 = vector.load %arg1[%c0, %c0_0] : memref<8x32xf32, #tpu.memory_space<vmem>>, vector<8x32xf32>
    %c0_1 = arith.constant 0 : index
    %c0_2 = arith.constant 0 : index
    %1 = vector.load %arg2[%c0_1, %c0_2] : memref<240x128xf32, #tpu.memory_space<vmem>>, vector<32x64xf32>
    %cst = arith.constant dense<0.000000e+00> : vector<8x64xf32>
    %2 = tpu.matmul %0, %1, %cst {dimension_numbers = #tpu.dot_dimension_numbers<[1], [0], [0], [1], [0, 0, 1, 1], [], []>} : vector<8x32xf32>, vector<32x64xf32>, vector<8x64xf32> -> vector<8x64xf32>
    %c0_3 = arith.constant 0 : index
    %c0_4 = arith.constant 0 : index
    %3 = vector.load %arg3[%c0_3, %c0_4] : memref<8x128xf32, #tpu.memory_space<vmem>>, vector<1x64xf32>
    %4 = vector.broadcast %3 : vector<1x64xf32> to vector<8x64xf32>
    %5 = arith.addf %2, %4 : vector<8x64xf32>
    %cst_5 = arith.constant 0.000000e+00 : f32
    %6 = vector.broadcast %cst_5 : f32 to vector<8x64xf32>
    %7 = arith.maximumf %5, %6 : vector<8x64xf32>
    %c32 = arith.constant 32 : index
    %c0_6 = arith.constant 0 : index
    %8 = vector.load %arg2[%c32, %c0_6] : memref<240x128xf32, #tpu.memory_space<vmem>>, vector<64x32xf32>
    %cst_7 = arith.constant dense<0.000000e+00> : vector<8x32xf32>
    %9 = tpu.matmul %7, %8, %cst_7 {dimension_numbers = #tpu.dot_dimension_numbers<[1], [0], [0], [1], [0, 0, 1, 1], [], []>} : vector<8x64xf32>, vector<64x32xf32>, vector<8x32xf32> -> vector<8x32xf32>
    %c1 = arith.constant 1 : index
    %c0_8 = arith.constant 0 : index
    %10 = vector.load %arg3[%c1, %c0_8] : memref<8x128xf32, #tpu.memory_space<vmem>>, vector<1x32xf32>
    %11 = vector.broadcast %10 : vector<1x32xf32> to vector<8x32xf32>
    %12 = arith.addf %9, %11 : vector<8x32xf32>
    %cst_9 = arith.constant 0.000000e+00 : f32
    %13 = vector.broadcast %cst_9 : f32 to vector<8x32xf32>
    %14 = arith.maximumf %12, %13 : vector<8x32xf32>
    %c96 = arith.constant 96 : index
    %c0_10 = arith.constant 0 : index
    %15 = vector.load %arg2[%c96, %c0_10] : memref<240x128xf32, #tpu.memory_space<vmem>>, vector<32x32xf32>
    %cst_11 = arith.constant dense<0.000000e+00> : vector<8x32xf32>
    %16 = tpu.matmul %14, %15, %cst_11 {dimension_numbers = #tpu.dot_dimension_numbers<[1], [0], [0], [1], [0, 0, 1, 1], [], []>} : vector<8x32xf32>, vector<32x32xf32>, vector<8x32xf32> -> vector<8x32xf32>
    %c2 = arith.constant 2 : index
    %c0_12 = arith.constant 0 : index
    %17 = vector.load %arg3[%c2, %c0_12] : memref<8x128xf32, #tpu.memory_space<vmem>>, vector<1x32xf32>
    %18 = vector.broadcast %17 : vector<1x32xf32> to vector<8x32xf32>
    %19 = arith.addf %16, %18 : vector<8x32xf32>
    %cst_13 = arith.constant 0.000000e+00 : f32
    %20 = vector.broadcast %cst_13 : f32 to vector<8x32xf32>
    %21 = arith.maximumf %19, %20 : vector<8x32xf32>
    %c128 = arith.constant 128 : index
    %c0_14 = arith.constant 0 : index
    %22 = vector.load %arg2[%c128, %c0_14] : memref<240x128xf32, #tpu.memory_space<vmem>>, vector<32x32xf32>
    %cst_15 = arith.constant dense<0.000000e+00> : vector<8x32xf32>
    %23 = tpu.matmul %21, %22, %cst_15 {dimension_numbers = #tpu.dot_dimension_numbers<[1], [0], [0], [1], [0, 0, 1, 1], [], []>} : vector<8x32xf32>, vector<32x32xf32>, vector<8x32xf32> -> vector<8x32xf32>
    %c3 = arith.constant 3 : index
    %c0_16 = arith.constant 0 : index
    %24 = vector.load %arg3[%c3, %c0_16] : memref<8x128xf32, #tpu.memory_space<vmem>>, vector<1x32xf32>
    %25 = vector.broadcast %24 : vector<1x32xf32> to vector<8x32xf32>
    %26 = arith.addf %23, %25 : vector<8x32xf32>
    %cst_17 = arith.constant 0.000000e+00 : f32
    %27 = vector.broadcast %cst_17 : f32 to vector<8x32xf32>
    %28 = arith.maximumf %26, %27 : vector<8x32xf32>
    %c160 = arith.constant 160 : index
    %c0_18 = arith.constant 0 : index
    %29 = vector.load %arg2[%c160, %c0_18] : memref<240x128xf32, #tpu.memory_space<vmem>>, vector<32x48xf32>
    %cst_19 = arith.constant dense<0.000000e+00> : vector<8x48xf32>
    %30 = tpu.matmul %28, %29, %cst_19 {dimension_numbers = #tpu.dot_dimension_numbers<[1], [0], [0], [1], [0, 0, 1, 1], [], []>} : vector<8x32xf32>, vector<32x48xf32>, vector<8x48xf32> -> vector<8x48xf32>
    %c4 = arith.constant 4 : index
    %c0_20 = arith.constant 0 : index
    %31 = vector.load %arg3[%c4, %c0_20] : memref<8x128xf32, #tpu.memory_space<vmem>>, vector<1x48xf32>
    %32 = vector.broadcast %31 : vector<1x48xf32> to vector<8x48xf32>
    %33 = arith.addf %30, %32 : vector<8x48xf32>
    %cst_21 = arith.constant 0.00999999977 : f32
    %34 = vector.broadcast %cst_21 : f32 to vector<8x48xf32>
    %35 = arith.mulf %34, %33 : vector<8x48xf32>
    %36 = arith.maximumf %33, %35 : vector<8x48xf32>
    %c192 = arith.constant 192 : index
    %c0_22 = arith.constant 0 : index
    %37 = vector.load %arg2[%c192, %c0_22] : memref<240x128xf32, #tpu.memory_space<vmem>>, vector<48x128xf32>
    %cst_23 = arith.constant dense<0.000000e+00> : vector<8x128xf32>
    %38 = tpu.matmul %36, %37, %cst_23 {dimension_numbers = #tpu.dot_dimension_numbers<[1], [0], [0], [1], [0, 0, 1, 1], [], []>} : vector<8x48xf32>, vector<48x128xf32>, vector<8x128xf32> -> vector<8x128xf32>
    %c5 = arith.constant 5 : index
    %c0_24 = arith.constant 0 : index
    %39 = vector.load %arg3[%c5, %c0_24] : memref<8x128xf32, #tpu.memory_space<vmem>>, vector<1x128xf32>
    %40 = vector.broadcast %39 : vector<1x128xf32> to vector<8x128xf32>
    %41 = arith.addf %38, %40 : vector<8x128xf32>
    %c0_25 = arith.constant 0 : index
    %c0_26 = arith.constant 0 : index
    %42 = vector.load %arg4[%c0_25, %c0_26] : memref<8x128xf32, #tpu.memory_space<vmem>>, vector<8x128xf32>
    tpu.vector_store %arg4[%c0_25, %c0_26], %41 {strides = array<i32>} : memref<8x128xf32, #tpu.memory_space<vmem>>, vector<8x128xf32>,
    return
  }
  func.func @transform_0(%arg0: i32) -> (i32, i32) {
    %c0_i32 = arith.constant 0 : i32
    %c0_i32_0 = arith.constant 0 : i32
    return %arg0, %c0_i32 : i32, i32
  }
  func.func @transform_1(%arg0: i32) -> (i32, i32) {
    %c0_i32 = arith.constant 0 : i32
    %c0_i32_0 = arith.constant 0 : i32
    %c0_i32_1 = arith.constant 0 : i32
    return %c0_i32, %c0_i32_0 : i32, i32
  }
  func.func @transform_2(%arg0: i32) -> (i32, i32) {
    %c0_i32 = arith.constant 0 : i32
    %c0_i32_0 = arith.constant 0 : i32
    %c0_i32_1 = arith.constant 0 : i32
    return %c0_i32, %c0_i32_0 : i32, i32
  }
  func.func @transform_3(%arg0: i32) -> (i32, i32) {
    %c0_i32 = arith.constant 0 : i32
    %c0_i32_0 = arith.constant 0 : i32
    return %arg0, %c0_i32 : i32, i32
  }
}

</mosaic_0001>

<bundles_post_ra>
// kernel: net_forward.1
= control target key start
LH: loop header
LB: loop body
LE: loop exit
PB: predicated region body
PF: predicated region fallthrough
CT: control target
= control target key end

     0   :  { %8 = vsyncpa [#allocation3], 0  ;;  %s743_s12 = smov [#allocation2]   ;;  %s836_s0 = inlined_call_operand.vmem [shape: f32[8,32], index: 0, kind: input, shape index: {}]   ;;  %s837_s1 = inlined_call_operand.hbm [shape: f32[240,128], index: 1, kind: input, shape index: {}]   ;;  %s838_s2 = inlined_call_operand.vmem [shape: f32[8,128], index: 2, kind: input, shape index: {}]   ;;  %s839_s3 = inlined_call_operand.vmem [shape: f32[8,128], index: 3, kind: output, shape index: {}]  }
   0x1   :  { %s16_s13 = sshll.u32 %s743_s12, 4  ;;  %s719_s16 = scalar_lea.hbm %s837_s1, 3840  ;;  %s17_s13 = int_to_ptr.vmem [resolvable:$true] %s16_s13 }
   0x2   :  { %p720_p0 = scmp.ne.s32.totalorder %s837_s1, %s719_s16  ;;  %p723_p1 = scmp.lt.u32.totalorder %s719_s16, %s837_s1 }
   0x4   :  { %p725_p2 = pnand %p723_p1, %p720_p0 }
   0x6   :  { %728 = shalt.err (!%p725_p2)
}
   0x7   :  { %s729_s21 = scalar_lea.vmem %s17_s13, 3840  ;;  %p734_p4 = scmp.lt.s32.totalorder %s17_s13, %s17_s13 }
   0x8   :  { %p730_p3 = scmp.ne.s32.totalorder %s17_s13, %s729_s21  ;;  %p735_p5 = scmp.lt.s32.totalorder %s729_s21, %s729_s21 }
   0xa   :  { %p736_p6 = por %p735_p5, %p734_p4 }
   0xc   :  { %p737_p7 = pnand %p736_p6, %p730_p3 }
   0xe   :  { %740 = shalt.err (!%p737_p7)
}
   0xf   :  { %s744_s22 = smov 128   ;;  %s745_s23 = smov 8  }
  0x10   :  { %22 = dma.hbm_to_vmem [thread:$0]  %s837_s1, 3840, %s17_s13, [#allocation3], %s744_s22, %s744_s22, %s745_s23  }
  0x11   :  { %741 = dma.done.wait [#allocation3], 3840  }
  0x12   :  { %742 = vsyncadd [#allocation3], 4294963456  ;;  %v746_v0 = vmov 0.0|0.0   ;;  %vm747_vm0 = vmmov 0   ;;  %v748_v1 = vmov 0.0   ;;  %v29_v2 = vld [vmem:[#allocation2] sm:$0xff] }
  0x13   :  { %668 = vmatprep.subr.bf16.mxu1 %v746_v0  ;;  %598 = vmatprep.mubr.msk.f32.mxu1 %vm747_vm0, %v748_v1  ;;  %v30_v3 = vld [vmem:[#allocation2 + $0x8] sm:$0xff]  ;;  %v31_v4 = vld [vmem:[#allocation2 + $0x10] sm:$0xff]  ;;  %v32_v6 = vld [vmem:[#allocation2 + $0x18] sm:$0xff]  ;;  %vm38_vm1 = vcmask 261120   ;;  %vm126_vm2 = vcmask 523264   ;;  %vm462_vm3 = vcmask 392192  }
  0x14   :  { %686 = vmatprep.subr.bf16.mxu0 %v746_v0  ;;  %628 = vmatprep.mubr.msk.f32.mxu0 %vm747_vm0, %v748_v1  ;;  %v669_v5 = vpack.c.bf16 %v30_v3, %v29_v2  ;;  %v672_v7 = vpack.c.bf16 %v32_v6, %v31_v4  ;;  %v113_v8 = vld [vmem:[#allocation2 + $0x20] sm:$0xff]  ;;  %v114_v9 = vld [vmem:[#allocation2 + $0x28] sm:$0xff]  ;;  %v115_v12 = vld [vmem:[#allocation2 + $0x30] sm:$0xff] }
  0x15   :  { %v28_v10 = vld [vmem:[%s836_s0] sm:$0xff]  ;;  %v675_v11 = vpack.c.bf16 %v114_v9, %v113_v8  ;;  %v116_v13 = vld [vmem:[#allocation2 + $0x38] sm:$0xff]  ;;  %v118_v16 = vld [vmem:[#allocation2 + $0x48] sm:$0xff] }
  0x16   :  { %670 = vmatpush3.bf16.msra.mxu1 %v669_v5  ;;  %v678_v14 = vpack.c.bf16 %v116_v13, %v115_v12  ;;  %v117_v15 = vld [vmem:[#allocation2 + $0x40] sm:$0xff]  ;;  %v119_v18 = vld [vmem:[#allocation2 + $0x50] sm:$0xff]  ;;  %v120_v19 = vld [vmem:[#allocation2 + $0x58] sm:$0xff] }
  0x17   :  { %671 = vmatprep.subr.bf16.mxu1 %v746_v0  ;;  %v681_v17 = vpack.c.bf16 %v118_v16, %v117_v15  ;;  %v684_v20 = vpack.c.bf16 %v120_v19, %v119_v18  ;;  %v201_v21 = vld [vmem:[#allocation2 + $0x60] sm:$0xff]  ;;  %v202_v22 = vld [vmem:[#allocation2 + $0x68] sm:$0xff]  ;;  %v203_v29 = vld [vmem:[#allocation2 + $0x70] sm:$0xff] }
  0x18   :  { %v687_v23 = vpack.c.bf16 %v202_v22, %v201_v21  ;;  %v542_v24 = vld [vmem:[%s838_s2] ss:$0 sm:$0xff]  ;;  %v204_v30 = vld [vmem:[#allocation2 + $0x78] sm:$0xff]  ;;  %v544_v32 = vld [vmem:[%s838_s2 + $0x1] ss:$0 sm:$0xff] }
  0x19   :  { %v690_v31 = vpack.c.bf16 %v204_v30, %v203_v29  ;;  %v284_v33 = vld [vmem:[#allocation2 + $0x80] sm:$0xff]  ;;  %v285_v34 = vld [vmem:[#allocation2 + $0x88] sm:$0xff]  ;;  %v286_v40 = vld [vmem:[#allocation2 + $0x90] sm:$0xff] }
  0x1a   :  { %673 = vmatpush3.bf16.msra.mxu1 %v672_v7  ;;  %688 = vmatpush3.bf16.msra.mxu0 %v687_v23  ;;  %v693_v38 = vpack.c.bf16 %v285_v34, %v284_v33  ;;  %v287_v41 = vld [vmem:[#allocation2 + $0x98] sm:$0xff]  ;;  %v367_v43 = vld [vmem:[#allocation2 + $0xa0] sm:$0xff]  ;;  %v368_v44 = vld [vmem:[#allocation2 + $0xa8] sm:$0xff] }
  0x1b   :  { %674 = vmatprep.subr.bf16.mxu1 %v746_v0  ;;  %689 = vmatprep.subr.bf16.mxu0 %v746_v0  ;;  %v696_v42 = vpack.c.bf16 %v287_v41, %v286_v40  ;;  %v699_v45 = vpack.c.bf16 %v368_v44, %v367_v43  ;;  %v546_v46 = vld [vmem:[%s838_s2 + $0x2] ss:$0 sm:$0xff]  ;;  %v369_v51 = vld [vmem:[#allocation2 + $0xb0] sm:$0xff]  ;;  %v370_v52 = vld [vmem:[#allocation2 + $0xb8] sm:$0xff] }
  0x1c   :  { %v702_v53 = vpack.c.bf16 %v370_v52, %v369_v51  ;;  %v451_v54 = vld [vmem:[#allocation2 + $0xc0] sm:$0xff]  ;;  %v452_v55 = vld [vmem:[#allocation2 + $0xc8] sm:$0xff]  ;;  %v453_v62 = vld [vmem:[#allocation2 + $0xd0] sm:$0xff] }
  0x1d   :  { %599 = vmatmul.mubr.msk.f32.vlgmr.msra.gmra.mrb[0].mxu1 %vm38_vm1, %v28_v10  ;;  %v705_v56 = vpack.c.bf16 %v452_v55, %v451_v54  ;;  %v548_v57 = vld [vmem:[%s838_s2 + $0x3] ss:$0 sm:$0xff]  ;;  %v454_v63 = vld [vmem:[#allocation2 + $0xd8] sm:$0xff]  ;;  %v456_v3 = vld [vmem:[#allocation2 + $0xe8] sm:$0xff] }
  0x1e   :  { %676 = vmatpush3.bf16.msra.mxu1 %v675_v11  ;;  %617 = vmatprep.mubr.msk.f32.mxu1 %vm747_vm0, %v748_v1  ;;  %v455_v2 = vld [vmem:[#allocation2 + $0xe0] sm:$0xff] }
  0x1f   :  { %677 = vmatprep.subr.bf16.mxu1 %v746_v0  ;;  %691 = vmatpush3.bf16.msra.mxu0 %v690_v31  ;;  %v711_v4 = vpack.c.bf16 %v456_v3, %v455_v2  ;;  %v550_v5 = vld [vmem:[%s838_s2 + $0x4] ss:$0 sm:$0xff]  ;;  %v552_v11 = vld [vmem:[%s838_s2 + $0x5] ss:$0 sm:$0xff] }
  0x20   :  { %692 = vmatprep.subr.bf16.mxu0 %v746_v0 }
  0x22   :  { %679 = vmatpush3.bf16.msra.mxu1 %v678_v14 }
  0x23   :  { %680 = vmatprep.subr.bf16.mxu1 %v746_v0 }
  0x26   :  { %682 = vmatpush3.bf16.msra.mxu1 %v681_v17 }
  0x27   :  { %683 = vmatprep.subr.bf16.mxu1 %v746_v0 }
  0x2a   :  { %685 = vmatpush3.bf16.msra.mxu1 %v684_v20 }
  0x2b   :  { %698 = vmatprep.subr.bf16.mxu1 %v746_v0 }
  0xf0   :  { %v108_v25 = vpop.f32.mrb[0].mxu1 }
  0xf1   :  { %v109_v26 = vadd.f32 %v542_v24, %v108_v25  ;;  %v600_v27 = vpop.f32.mrb[1].mxu1 }
  0xf3   :  { %v112_v28 = vmax.f32 %v109_v26, 0.0 }
  0xf5   :  { %618 = vmatmul.mubr.msk.f32.vlgmr.msra.gmra.mrb[2].mxu1 %vm126_vm2, %v112_v28 }
  0xf6   :  { %650 = vmatprep.mubr.msk.f32.mxu1 %vm747_vm0, %v748_v1  ;;  %700 = vmatpush3.bf16.msra.mxu1 %v699_v45 }
  0xf7   :  { %701 = vmatprep.subr.bf16.mxu1 %v746_v0 }
  0xfa   :  { %703 = vmatpush3.bf16.msra.mxu1 %v702_v53 }
 0x1c8   :  { %v196_v35 = vpop.f32.mrb[2].mxu1 }
 0x1c9   :  { %v197_v36 = vadd.f32 %v544_v32, %v196_v35  ;;  %v619_v37 = vpop.f32.mrb[3].mxu1 }
 0x1cb   :  { %v200_v39 = vmax.f32 %v197_v36, 0.0 }
 0x1cd   :  { %629 = vmatmul.mubr.msk.f32.vlgmr.msra.gmra.mrb[0].mxu0 %vm38_vm1, %v200_v39 }
 0x1ce   :  { %694 = vmatpush3.bf16.msra.mxu0 %v693_v38  ;;  %639 = vmatprep.mubr.msk.f32.mxu0 %vm747_vm0, %v748_v1 }
 0x1cf   :  { %695 = vmatprep.subr.bf16.mxu0 %v746_v0 }
 0x1d2   :  { %697 = vmatpush3.bf16.msra.mxu0 %v696_v42 }
 0x1d3   :  { %704 = vmatprep.subr.bf16.mxu0 %v746_v0 }
 0x2a0   :  { %v279_v47 = vpop.f32.mrb[0].mxu0 }
 0x2a1   :  { %v280_v48 = vadd.f32 %v546_v46, %v279_v47  ;;  %v630_v49 = vpop.f32.mrb[1].mxu0 }
 0x2a3   :  { %v283_v50 = vmax.f32 %v280_v48, 0.0 }
 0x2a5   :  { %640 = vmatmul.mubr.msk.f32.vlgmr.msra.gmra.mrb[2].mxu0 %vm38_vm1, %v283_v50 }
 0x2a6   :  { %665 = vmatprep.mubr.msk.f32.mxu0 %vm747_vm0, %v748_v1  ;;  %706 = vmatpush3.bf16.msra.mxu0 %v705_v56  ;;  %v708_v1 = vpack.c.bf16 %v454_v63, %v453_v62 }
 0x2a7   :  { %707 = vmatprep.subr.bf16.mxu0 %v746_v0 }
 0x2aa   :  { %709 = vmatpush3.bf16.msra.mxu0 %v708_v1 }
 0x2ab   :  { %710 = vmatprep.subr.bf16.mxu0 %v746_v0 }
 0x2ae   :  { %712 = vmatpush3.bf16.msra.mxu0 %v711_v4 }
 0x378   :  { %v362_v58 = vpop.f32.mrb[2].mxu0 }
 0x379   :  { %v363_v59 = vadd.f32 %v548_v57, %v362_v58  ;;  %v641_v60 = vpop.f32.mrb[3].mxu0 }
 0x37b   :  { %v366_v61 = vmax.f32 %v363_v59, 0.0 }
 0x37d   :  { %651 = vmatmul.mubr.msk.f32.vlgmr.msra.gmra.mrb[4].mxu1 %vm38_vm1, %v366_v61 }
 0x450   :  { %v445_v6 = vpop.f32.mrb[4].mxu1 }
 0x451   :  { %v446_v7 = vadd.f32 %v550_v5, %v445_v6  ;;  %v652_v8 = vpop.f32.mrb[5].mxu1 }
 0x453   :  { %v449_v9 = vmul.f32 0.01, %v446_v7 }
 0x455   :  { %v450_v10 = vmax.f32 %v446_v7, %v449_v9 }
 0x457   :  { %666 = vmatmul.mubr.msk.f32.vlgmr.msra.gmra.mrb[4].mxu0 %vm462_vm3, %v450_v10 }
 0x52a   :  { %v532_v0 = vpop.f32.mrb[4].mxu0 }
 0x52b   :  { %v533_v12 = vadd.f32 %v552_v11, %v532_v0  ;;  %v667_v13 = vpop.f32.mrb[5].mxu0 }
 0x52d   :  { %536 = vst [vmem:[%s839_s3] sm:$0xff] %v533_v12 }
 0x52e   :  { %541 = vsyncpa [#allocation3], 1 }

</bundles_post_ra>
